<compile_context>
chip_gen: v7x
topology: tpu7x:2x2x1
jax: 0.10.0
libtpu: 0.0.40
codegen_flags: <defaults>
</compile_context>

<pallas_src>
import functools

import jax
import jax.numpy as jnp
from jax.experimental import pallas as pl
from jax.experimental.pallas import tpu as pltpu


# ----------------------------------------------------------------------------
# Pallas kernels
# ----------------------------------------------------------------------------
def _triconv_tile(xin_ref, w1_ref, b1_ref, w2_ref, b2_ref):
    """Shared TriConv body for one node tile.

    xin_ref : (K, TM, C) bf16  per-edge MLP inputs, k-major
    w1_ref  : (C, H) bf16 ; b1_ref : (1, H) f32
    w2_ref  : (H, H) bf16 ; b2_ref : (1, H) f32
    returns : (TM, H) f32  -- sum over the K edges of MLP(edge)  (== scatter_add)
    """
    K, TM, C = xin_ref.shape
    # Collapse K into the matmul M dimension.  TM is a multiple of the bf16
    # sublane tile (16), so this leading-dim merge is layout-preserving.
    x2d = xin_ref[...].reshape(K * TM, C)
    h = jnp.dot(x2d, w1_ref[...], preferred_element_type=jnp.float32)
    h = jnp.maximum(h + b1_ref[...], 0.0)                       # bias + ReLU, f32
    h = jnp.dot(h.astype(w2_ref.dtype), w2_ref[...],
                preferred_element_type=jnp.float32)
    h = h + b2_ref[...]
    # scatter_add over source nodes == sum of K contiguous (TM, H) slabs.
    acc = h[0:TM, :]
    for k in range(1, K):                                       # K is static, small
        acc = acc + h[k * TM:(k + 1) * TM, :]
    return acc


def triconv_kernel(xin_ref, w1_ref, b1_ref, w2_ref, b2_ref, out_ref):
    out_ref[...] = _triconv_tile(xin_ref, w1_ref, b1_ref, w2_ref, b2_ref)


def triconv_final_kernel(xin_ref, w1_ref, b1_ref, w2_ref, b2_ref,
                         wf_ref, bf_ref, prob_ref):
    """Third TriConv with fused Linear(H, 1) + sigmoid epilogue."""
    feat = _triconv_tile(xin_ref, w1_ref, b1_ref, w2_ref, b2_ref)
    logits = jnp.dot(feat, wf_ref[...],
                     preferred_element_type=jnp.float32) + bf_ref[...]
    prob_ref[...] = 1.0 / (1.0 + jnp.exp(-logits))


# ----------------------------------------------------------------------------
# Pallas wrappers
# ----------------------------------------------------------------------------
def _round_up(x, m):
    return ((x + m - 1) // m) * m


def _pick_tile(T, max_tm=512):
    # Biggest node tile up to max_tm; multiple of 16 for bf16 sublane packing.
    # At max_tm=512, H=128, K=20 the double-buffered input block is ~10.5 MiB,
    # well inside the 32 MiB default scoped VMEM on v5e/v6e/v7x.  If max_tm is
    # raised much further, set vmem_limit_bytes and re-derive against v7x's
    # 64 MiB physical VMEM.
    return min(max_tm, _round_up(T, 16))


def triconv_layer_pallas(mlp_in, w1, b1, w2, b2, *, tm, final_params=None):
    """mlp_in: (K, Tp, C) bf16 with Tp % tm == 0.

    Returns (Tp, H) f32 features, or (Tp, 1) f32 sigmoid probabilities when
    final_params=(wf, bf) is given (fused final layer).
    """
    K, Tp, C = mlp_in.shape
    H = w1.shape[1]
    grid = (Tp // tm,)

    in_specs = [
        pl.BlockSpec((K, tm, C), lambda i: (0, i, 0)),   # edge inputs (k-major)
        pl.BlockSpec((C, H), lambda i: (0, 0)),          # w1
        pl.BlockSpec((1, H), lambda i: (0, 0)),          # b1
        pl.BlockSpec((H, H), lambda i: (0, 0)),          # w2
        pl.BlockSpec((1, H), lambda i: (0, 0)),          # b2
    ]
    args = [mlp_in,
            w1.astype(jnp.bfloat16), b1.reshape(1, H).astype(jnp.float32),
            w2.astype(jnp.bfloat16), b2.reshape(1, H).astype(jnp.float32)]

    if final_params is None:
        kernel = triconv_kernel
        out_shape = jax.ShapeDtypeStruct((Tp, H), jnp.float32)
        out_spec = pl.BlockSpec((tm, H), lambda i: (i, 0))
    else:
        wf, bf = final_params
        kernel = triconv_final_kernel
        out_shape = jax.ShapeDtypeStruct((Tp, 1), jnp.float32)
        out_spec = pl.BlockSpec((tm, 1), lambda i: (i, 0))
        in_specs += [pl.BlockSpec((H, 1), lambda i: (0, 0)),   # wf
                     pl.BlockSpec((1, 1), lambda i: (0, 0))]   # bf
        args += [wf.astype(jnp.float32), bf.reshape(1, 1).astype(jnp.float32)]

    return pl.pallas_call(
        kernel,
        out_shape=out_shape,
        grid=grid,
        in_specs=in_specs,
        out_specs=out_spec,
        compiler_params=pltpu.CompilerParams(
            dimension_semantics=("parallel",)),
    )(*args)


# ----------------------------------------------------------------------------
# Plain-JAX glue (KNN graph, neighbor gather) matching the PyTorch semantics
# ----------------------------------------------------------------------------
def knn_neighbors(barycenters, k):
    """k nearest neighbors by Euclidean distance; self excluded by masking the
    diagonal to +inf (robust to duplicate barycenters)."""
    # TODO(synk): cdist + top_k kept in plain JAX -- no clean Pallas TPU top_k.
    d2 = jnp.sum((barycenters[:, None, :] - barycenters[None, :, :]) ** 2,
                 axis=-1)
    T = d2.shape[0]
    d2 = jnp.where(jnp.eye(T, dtype=bool), jnp.inf, d2)
    _, idx = jax.lax.top_k(-d2, k)
    return idx                                             # (T, k)


def face_classifier_forward(points, triangles, init_probs, params,
                            hidden_dim, k_neighbors, max_tm=512):
    T = triangles.shape[0]
    if T == 0:
        return jnp.zeros((0,), jnp.float32)
    points = points.astype(jnp.float32)
    init_probs = init_probs.astype(jnp.float32)

    # Per-triangle geometry (identical across the three TriConv layers).
    tri_pts = points[triangles]                            # (T, 3, 3)
    e_ij = tri_pts[:, 0] - tri_pts[:, 1]
    e_ik = tri_pts[:, 0] - tri_pts[:, 2]
    e_jk = tri_pts[:, 1] - tri_pts[:, 2]
    edge_vectors = jnp.stack([e_ij, e_ik, e_jk], axis=1)   # (T, 3, 3)
    t_max = edge_vectors.max(axis=1)
    t_min = edge_vectors.min(axis=1)
    bary = tri_pts.mean(axis=1)
    geo = jnp.concatenate([t_min, t_max, bary], axis=-1)   # (T, 9), same order
                                                           # as reference r_n_k

    k = min(k_neighbors, T - 1)
    tgt_t = knn_neighbors(bary, k).T                       # (k, T), k-major

    tm = _pick_tile(T, max_tm)
    Tp = _round_up(T, tm)
    pad_t = Tp - T

    def build_mlp_in(x):
        # Node features [t_min, t_max, bary, x]; per-edge input is src - tgt,
        # matching cat([r_n_k, feature_diff]) of the reference.
        # Pad rows are zeros; their MLP output is nonzero (biases) but is
        # sliced off before reuse, so results are unaffected.
        # TODO(synk): this (K, T, C) gather is still materialized in HBM; an
        # in-kernel gather via scalar prefetch would cut HBM traffic further.
        nf = jnp.concatenate([geo, x], axis=-1)            # (T, C)
        diff = nf[None, :, :] - nf[tgt_t]                  # (K, T, C)
        diff = jnp.pad(diff, ((0, 0), (0, pad_t), (0, 0)))
        return diff.astype(jnp.bfloat16)

    x = jnp.broadcast_to(init_probs[:, None], (T, hidden_dim))
    x = triconv_layer_pallas(build_mlp_in(x), *params["tc1"], tm=tm)[:T]
    x = triconv_layer_pallas(build_mlp_in(x), *params["tc2"], tm=tm)[:T]
    probs = triconv_layer_pallas(build_mlp_in(x), *params["tc3"], tm=tm,
                                 final_params=(params["wf"], params["bf"]))
    return probs[:T, 0]


# ----------------------------------------------------------------------------
# Deterministic parameter init (nn.Linear-style uniform)
# ----------------------------------------------------------------------------
def _linear_init(key, fan_in, fan_out):
    kw, kb = jax.random.split(key)
    bound = 1.0 / jnp.sqrt(fan_in)
    w = jax.random.uniform(kw, (fan_in, fan_out), jnp.float32, -bound, bound)
    b = jax.random.uniform(kb, (fan_out,), jnp.float32, -bound, bound)
    return w, b


def init_params(key, hidden_dim):
    keys = jax.random.split(key, 7)
    params = {}
    for name, kk in zip(("tc1", "tc2", "tc3"), keys[:3]):
        k1, k2 = jax.random.split(kk)
        w1, b1 = _linear_init(k1, hidden_dim + 9, hidden_dim)
        w2, b2 = _linear_init(k2, hidden_dim, hidden_dim)
        params[name] = (w1, b1, w2, b2)
    wf, bf = _linear_init(keys[3], hidden_dim, 1)
    params["wf"], params["bf"] = wf, bf
    return params


# ----------------------------------------------------------------------------
if __name__ == "__main__":
    HIDDEN_DIM = 32
    K_NEIGHBORS = 4
    N_POINTS = 48
    N_TRIANGLES = 64

    key = jax.random.PRNGKey(0)
    k_pts, k_tri, k_prob, k_param = jax.random.split(key, 4)

    points = jax.random.normal(k_pts, (N_POINTS, 3), jnp.float32)
    triangles = jax.random.randint(k_tri, (N_TRIANGLES, 3), 0, N_POINTS,
                                   dtype=jnp.int32)
    init_probs = jax.random.uniform(k_prob, (N_TRIANGLES,), jnp.float32)

    params = init_params(k_param, HIDDEN_DIM)

    fwd = jax.jit(functools.partial(face_classifier_forward,
                                    hidden_dim=HIDDEN_DIM,
                                    k_neighbors=K_NEIGHBORS))
    triangle_probs = fwd(points, triangles, init_probs, params)
    triangle_probs = jax.block_until_ready(triangle_probs)

    assert triangle_probs.shape == (N_TRIANGLES,)
    assert triangle_probs.dtype == jnp.float32
    assert bool(jnp.all(jnp.isfinite(triangle_probs)))
    assert bool(jnp.all((triangle_probs >= 0.0) & (triangle_probs <= 1.0)))
    print("KERNEL_OK")
</pallas_src>

<mosaic_0001>
module attributes {stable_mosaic.version = 11 : i64} {
  func.func @triconv_kernel(%arg0: i32, %arg1: memref<4x64x41xbf16, #tpu.memory_space<vmem>>, %arg2: memref<41x32xbf16, #tpu.memory_space<vmem>>, %arg3: memref<1x32xf32, #tpu.memory_space<vmem>>, %arg4: memref<32x32xbf16, #tpu.memory_space<vmem>>, %arg5: memref<1x32xf32, #tpu.memory_space<vmem>>, %arg6: memref<64x32xf32, #tpu.memory_space<vmem>>) attributes {dimension_semantics = [#tpu.dimension_semantics<parallel>], iteration_bounds = array<i64: 1>, scalar_prefetch = 0 : i64, scratch_operands = 0 : i64, tpu.core_type = #tpu.core_type<tc>, window_params = [{transform_indices = @transform_0, window_bounds = array<i64: 4, 64, 41>}, {pipeline_mode = #tpu.pipeline_mode<synchronous>, transform_indices = @transform_1, window_bounds = array<i64: 41, 32>}, {pipeline_mode = #tpu.pipeline_mode<synchronous>, transform_indices = @transform_2, window_bounds = array<i64: 1, 32>}, {pipeline_mode = #tpu.pipeline_mode<synchronous>, transform_indices = @transform_3, window_bounds = array<i64: 32, 32>}, {pipeline_mode = #tpu.pipeline_mode<synchronous>, transform_indices = @transform_4, window_bounds = array<i64: 1, 32>}, {transform_indices = @transform_5, window_bounds = array<i64: 64, 32>}]} {
    %c0 = arith.constant 0 : index
    %c0_0 = arith.constant 0 : index
    %c0_1 = arith.constant 0 : index
    %0 = vector.load %arg1[%c0, %c0_0, %c0_1] : memref<4x64x41xbf16, #tpu.memory_space<vmem>>, vector<4x64x41xbf16>
    %1 = vector.shape_cast %0 : vector<4x64x41xbf16> to vector<256x41xbf16>
    %c0_2 = arith.constant 0 : index
    %c0_3 = arith.constant 0 : index
    %2 = vector.load %arg2[%c0_2, %c0_3] : memref<41x32xbf16, #tpu.memory_space<vmem>>, vector<41x32xbf16>
    %cst = arith.constant dense<0.000000e+00> : vector<256x32xf32>
    %3 = tpu.matmul %1, %2, %cst {dimension_numbers = #tpu.dot_dimension_numbers<[1], [0], [0], [1], [0, 0, 1, 1], [], []>} : vector<256x41xbf16>, vector<41x32xbf16>, vector<256x32xf32> -> vector<256x32xf32>
    %c0_4 = arith.constant 0 : index
    %c0_5 = arith.constant 0 : index
    %4 = vector.load %arg3[%c0_4, %c0_5] : memref<1x32xf32, #tpu.memory_space<vmem>>, vector<1x32xf32>
    %5 = vector.broadcast %4 : vector<1x32xf32> to vector<256x32xf32>
    %6 = arith.addf %3, %5 : vector<256x32xf32>
    %cst_6 = arith.constant 0.000000e+00 : f32
    %7 = vector.broadcast %cst_6 : f32 to vector<256x32xf32>
    %8 = arith.maximumf %6, %7 : vector<256x32xf32>
    %9 = arith.truncf %8 : vector<256x32xf32> to vector<256x32xbf16>
    %c0_7 = arith.constant 0 : index
    %c0_8 = arith.constant 0 : index
    %10 = vector.load %arg4[%c0_7, %c0_8] : memref<32x32xbf16, #tpu.memory_space<vmem>>, vector<32x32xbf16>
    %cst_9 = arith.constant dense<0.000000e+00> : vector<256x32xf32>
    %11 = tpu.matmul %9, %10, %cst_9 {dimension_numbers = #tpu.dot_dimension_numbers<[1], [0], [0], [1], [0, 0, 1, 1], [], []>} : vector<256x32xbf16>, vector<32x32xbf16>, vector<256x32xf32> -> vector<256x32xf32>
    %c0_10 = arith.constant 0 : index
    %c0_11 = arith.constant 0 : index
    %12 = vector.load %arg5[%c0_10, %c0_11] : memref<1x32xf32, #tpu.memory_space<vmem>>, vector<1x32xf32>
    %13 = vector.broadcast %12 : vector<1x32xf32> to vector<256x32xf32>
    %14 = arith.addf %11, %13 : vector<256x32xf32>
    %15 = vector.extract_strided_slice %14 {offsets = [0, 0], sizes = [64, 32], strides = [1, 1]} : vector<256x32xf32> to vector<64x32xf32>
    %16 = vector.extract_strided_slice %14 {offsets = [64, 0], sizes = [64, 32], strides = [1, 1]} : vector<256x32xf32> to vector<64x32xf32>
    %17 = arith.addf %15, %16 : vector<64x32xf32>
    %18 = vector.extract_strided_slice %14 {offsets = [128, 0], sizes = [64, 32], strides = [1, 1]} : vector<256x32xf32> to vector<64x32xf32>
    %19 = arith.addf %17, %18 : vector<64x32xf32>
    %20 = vector.extract_strided_slice %14 {offsets = [192, 0], sizes = [64, 32], strides = [1, 1]} : vector<256x32xf32> to vector<64x32xf32>
    %21 = arith.addf %19, %20 : vector<64x32xf32>
    %c0_12 = arith.constant 0 : index
    %c0_13 = arith.constant 0 : index
    %22 = vector.load %arg6[%c0_12, %c0_13] : memref<64x32xf32, #tpu.memory_space<vmem>>, vector<64x32xf32>
    tpu.vector_store %arg6[%c0_12, %c0_13], %21 {strides = array<i32>} : memref<64x32xf32, #tpu.memory_space<vmem>>, vector<64x32xf32>,
    return
  }
  func.func @transform_0(%arg0: i32) -> (i32, i32, i32) {
    %c0_i32 = arith.constant 0 : i32
    %c0_i32_0 = arith.constant 0 : i32
    %c0_i32_1 = arith.constant 0 : i32
    return %c0_i32, %arg0, %c0_i32_0 : i32, i32, i32
  }
  func.func @transform_1(%arg0: i32) -> (i32, i32) {
    %c0_i32 = arith.constant 0 : i32
    %c0_i32_0 = arith.constant 0 : i32
    %c0_i32_1 = arith.constant 0 : i32
    return %c0_i32, %c0_i32_0 : i32, i32
  }
  func.func @transform_2(%arg0: i32) -> (i32, i32) {
    %c0_i32 = arith.constant 0 : i32
    %c0_i32_0 = arith.constant 0 : i32
    %c0_i32_1 = arith.constant 0 : i32
    return %c0_i32, %c0_i32_0 : i32, i32
  }
  func.func @transform_3(%arg0: i32) -> (i32, i32) {
    %c0_i32 = arith.constant 0 : i32
    %c0_i32_0 = arith.constant 0 : i32
    %c0_i32_1 = arith.constant 0 : i32
    return %c0_i32, %c0_i32_0 : i32, i32
  }
  func.func @transform_4(%arg0: i32) -> (i32, i32) {
    %c0_i32 = arith.constant 0 : i32
    %c0_i32_0 = arith.constant 0 : i32
    %c0_i32_1 = arith.constant 0 : i32
    return %c0_i32, %c0_i32_0 : i32, i32
  }
  func.func @transform_5(%arg0: i32) -> (i32, i32) {
    %c0_i32 = arith.constant 0 : i32
    %c0_i32_0 = arith.constant 0 : i32
    return %arg0, %c0_i32 : i32, i32
  }
}

module attributes {stable_mosaic.version = 11 : i64} {
  func.func @triconv_final_kernel(%arg0: i32, %arg1: memref<4x64x41xbf16, #tpu.memory_space<vmem>>, %arg2: memref<41x32xbf16, #tpu.memory_space<vmem>>, %arg3: memref<1x32xf32, #tpu.memory_space<vmem>>, %arg4: memref<32x32xbf16, #tpu.memory_space<vmem>>, %arg5: memref<1x32xf32, #tpu.memory_space<vmem>>, %arg6: memref<32x1xf32, #tpu.memory_space<vmem>>, %arg7: memref<1x1xf32, #tpu.memory_space<vmem>>, %arg8: memref<64x1xf32, #tpu.memory_space<vmem>>) attributes {dimension_semantics = [#tpu.dimension_semantics<parallel>], iteration_bounds = array<i64: 1>, scalar_prefetch = 0 : i64, scratch_operands = 0 : i64, tpu.core_type = #tpu.core_type<tc>, window_params = [{transform_indices = @transform_0, window_bounds = array<i64: 4, 64, 41>}, {pipeline_mode = #tpu.pipeline_mode<synchronous>, transform_indices = @transform_1, window_bounds = array<i64: 41, 32>}, {pipeline_mode = #tpu.pipeline_mode<synchronous>, transform_indices = @transform_2, window_bounds = array<i64: 1, 32>}, {pipeline_mode = #tpu.pipeline_mode<synchronous>, transform_indices = @transform_3, window_bounds = array<i64: 32, 32>}, {pipeline_mode = #tpu.pipeline_mode<synchronous>, transform_indices = @transform_4, window_bounds = array<i64: 1, 32>}, {pipeline_mode = #tpu.pipeline_mode<synchronous>, transform_indices = @transform_5, window_bounds = array<i64: 32, 1>}, {pipeline_mode = #tpu.pipeline_mode<synchronous>, transform_indices = @transform_6, window_bounds = array<i64: 1, 1>}, {transform_indices = @transform_7, window_bounds = array<i64: 64, 1>}]} {
    %c0 = arith.constant 0 : index
    %c0_0 = arith.constant 0 : index
    %c0_1 = arith.constant 0 : index
    %0 = vector.load %arg1[%c0, %c0_0, %c0_1] : memref<4x64x41xbf16, #tpu.memory_space<vmem>>, vector<4x64x41xbf16>
    %1 = vector.shape_cast %0 : vector<4x64x41xbf16> to vector<256x41xbf16>
    %c0_2 = arith.constant 0 : index
    %c0_3 = arith.constant 0 : index
    %2 = vector.load %arg2[%c0_2, %c0_3] : memref<41x32xbf16, #tpu.memory_space<vmem>>, vector<41x32xbf16>
    %cst = arith.constant dense<0.000000e+00> : vector<256x32xf32>
    %3 = tpu.matmul %1, %2, %cst {dimension_numbers = #tpu.dot_dimension_numbers<[1], [0], [0], [1], [0, 0, 1, 1], [], []>} : vector<256x41xbf16>, vector<41x32xbf16>, vector<256x32xf32> -> vector<256x32xf32>
    %c0_4 = arith.constant 0 : index
    %c0_5 = arith.constant 0 : index
    %4 = vector.load %arg3[%c0_4, %c0_5] : memref<1x32xf32, #tpu.memory_space<vmem>>, vector<1x32xf32>
    %5 = vector.broadcast %4 : vector<1x32xf32> to vector<256x32xf32>
    %6 = arith.addf %3, %5 : vector<256x32xf32>
    %cst_6 = arith.constant 0.000000e+00 : f32
    %7 = vector.broadcast %cst_6 : f32 to vector<256x32xf32>
    %8 = arith.maximumf %6, %7 : vector<256x32xf32>
    %9 = arith.truncf %8 : vector<256x32xf32> to vector<256x32xbf16>
    %c0_7 = arith.constant 0 : index
    %c0_8 = arith.constant 0 : index
    %10 = vector.load %arg4[%c0_7, %c0_8] : memref<32x32xbf16, #tpu.memory_space<vmem>>, vector<32x32xbf16>
    %cst_9 = arith.constant dense<0.000000e+00> : vector<256x32xf32>
    %11 = tpu.matmul %9, %10, %cst_9 {dimension_numbers = #tpu.dot_dimension_numbers<[1], [0], [0], [1], [0, 0, 1, 1], [], []>} : vector<256x32xbf16>, vector<32x32xbf16>, vector<256x32xf32> -> vector<256x32xf32>
    %c0_10 = arith.constant 0 : index
    %c0_11 = arith.constant 0 : index
    %12 = vector.load %arg5[%c0_10, %c0_11] : memref<1x32xf32, #tpu.memory_space<vmem>>, vector<1x32xf32>
    %13 = vector.broadcast %12 : vector<1x32xf32> to vector<256x32xf32>
    %14 = arith.addf %11, %13 : vector<256x32xf32>
    %15 = vector.extract_strided_slice %14 {offsets = [0, 0], sizes = [64, 32], strides = [1, 1]} : vector<256x32xf32> to vector<64x32xf32>
    %16 = vector.extract_strided_slice %14 {offsets = [64, 0], sizes = [64, 32], strides = [1, 1]} : vector<256x32xf32> to vector<64x32xf32>
    %17 = arith.addf %15, %16 : vector<64x32xf32>
    %18 = vector.extract_strided_slice %14 {offsets = [128, 0], sizes = [64, 32], strides = [1, 1]} : vector<256x32xf32> to vector<64x32xf32>
    %19 = arith.addf %17, %18 : vector<64x32xf32>
    %20 = vector.extract_strided_slice %14 {offsets = [192, 0], sizes = [64, 32], strides = [1, 1]} : vector<256x32xf32> to vector<64x32xf32>
    %21 = arith.addf %19, %20 : vector<64x32xf32>
    %c0_12 = arith.constant 0 : index
    %c0_13 = arith.constant 0 : index
    %22 = vector.load %arg6[%c0_12, %c0_13] : memref<32x1xf32, #tpu.memory_space<vmem>>, vector<32x1xf32>
    %cst_14 = arith.constant dense<0.000000e+00> : vector<64x1xf32>
    %23 = tpu.matmul %21, %22, %cst_14 {dimension_numbers = #tpu.dot_dimension_numbers<[1], [0], [0], [1], [0, 0, 1, 1], [], []>} : vector<64x32xf32>, vector<32x1xf32>, vector<64x1xf32> -> vector<64x1xf32>
    %c0_15 = arith.constant 0 : index
    %c0_16 = arith.constant 0 : index
    %24 = vector.load %arg7[%c0_15, %c0_16] : memref<1x1xf32, #tpu.memory_space<vmem>>, vector<1x1xf32>
    %25 = vector.broadcast %24 : vector<1x1xf32> to vector<64x1xf32>
    %26 = arith.addf %23, %25 : vector<64x1xf32>
    %cst_17 = arith.constant 0.000000e+00 : f32
    %27 = vector.broadcast %cst_17 : f32 to vector<64x1xf32>
    %28 = arith.subf %27, %26 : vector<64x1xf32>
    %29 = math.exp %28 : vector<64x1xf32>
    %cst_18 = arith.constant 1.000000e+00 : f32
    %30 = vector.broadcast %cst_18 : f32 to vector<64x1xf32>
    %31 = arith.addf %30, %29 : vector<64x1xf32>
    %cst_19 = arith.constant 1.000000e+00 : f32
    %32 = vector.broadcast %cst_19 : f32 to vector<64x1xf32>
    %33 = arith.divf %32, %31 : vector<64x1xf32>
    %c0_20 = arith.constant 0 : index
    %c0_21 = arith.constant 0 : index
    %34 = vector.load %arg8[%c0_20, %c0_21] : memref<64x1xf32, #tpu.memory_space<vmem>>, vector<64x1xf32>
    tpu.vector_store %arg8[%c0_20, %c0_21], %33 {strides = array<i32>} : memref<64x1xf32, #tpu.memory_space<vmem>>, vector<64x1xf32>,
    return
  }
  func.func @transform_0(%arg0: i32) -> (i32, i32, i32) {
    %c0_i32 = arith.constant 0 : i32
    %c0_i32_0 = arith.constant 0 : i32
    %c0_i32_1 = arith.constant 0 : i32
    return %c0_i32, %arg0, %c0_i32_0 : i32, i32, i32
  }
  func.func @transform_1(%arg0: i32) -> (i32, i32) {
    %c0_i32 = arith.constant 0 : i32
    %c0_i32_0 = arith.constant 0 : i32
    %c0_i32_1 = arith.constant 0 : i32
    return %c0_i32, %c0_i32_0 : i32, i32
  }
  func.func @transform_2(%arg0: i32) -> (i32, i32) {
    %c0_i32 = arith.constant 0 : i32
    %c0_i32_0 = arith.constant 0 : i32
    %c0_i32_1 = arith.constant 0 : i32
    return %c0_i32, %c0_i32_0 : i32, i32
  }
  func.func @transform_3(%arg0: i32) -> (i32, i32) {
    %c0_i32 = arith.constant 0 : i32
    %c0_i32_0 = arith.constant 0 : i32
    %c0_i32_1 = arith.constant 0 : i32
    return %c0_i32, %c0_i32_0 : i32, i32
  }
  func.func @transform_4(%arg0: i32) -> (i32, i32) {
    %c0_i32 = arith.constant 0 : i32
    %c0_i32_0 = arith.constant 0 : i32
    %c0_i32_1 = arith.constant 0 : i32
    return %c0_i32, %c0_i32_0 : i32, i32
  }
  func.func @transform_5(%arg0: i32) -> (i32, i32) {
    %c0_i32 = arith.constant 0 : i32
    %c0_i32_0 = arith.constant 0 : i32
    %c0_i32_1 = arith.constant 0 : i32
    return %c0_i32, %c0_i32_0 : i32, i32
  }
  func.func @transform_6(%arg0: i32) -> (i32, i32) {
    %c0_i32 = arith.constant 0 : i32
    %c0_i32_0 = arith.constant 0 : i32
    %c0_i32_1 = arith.constant 0 : i32
    return %c0_i32, %c0_i32_0 : i32, i32
  }
  func.func @transform_7(%arg0: i32) -> (i32, i32) {
    %c0_i32 = arith.constant 0 : i32
    %c0_i32_0 = arith.constant 0 : i32
    return %arg0, %c0_i32 : i32, i32
  }
}

</mosaic_0001>

<bundles_post_ra>
// kernel: face_classifier_forward.3
= control target key start
LH: loop header
LB: loop body
LE: loop exit
PB: predicated region body
PF: predicated region fallthrough
CT: control target
= control target key end

     0   :  { %vm212_vm0 = vcmask 1043456   ;;  %vm213_vm1 = vcmask 1044480   ;;  %vm163_vm2 = vcmask 334848   ;;  %v941_v1 = vmov 65535   ;;  %s1139_s1 = inlined_call_operand.vmem [shape: bf16[41,32], index: 1, kind: input, shape index: {}]   ;;  %s1140_s0 = inlined_call_operand.vmem [shape: bf16[4,64,41], index: 0, kind: input, shape index: {}]   ;;  %s1141_s3 = inlined_call_operand.vmem [shape: bf16[32,32], index: 3, kind: input, shape index: {}]   ;;  %s1142_s2 = inlined_call_operand.vmem [shape: f32[1,32], index: 2, kind: input, shape index: {}]   ;;  %s1143_s4 = inlined_call_operand.vmem [shape: f32[1,32], index: 4, kind: input, shape index: {}]   ;;  %s1144_s5 = inlined_call_operand.vmem [shape: f32[64,32], index: 5, kind: output, shape index: {}]  }
   0x1   :  { %v920_v0 = vld [vmem:[%s1139_s1] sm:$0xff]   ;;  %v214_v2 = vsel %vm212_vm0, 4294967295, %v941_v1  ;;  %v921_v3 = vld [vmem:[%s1139_s1 + $0x8] sm:$0xff]   ;;  %v922_v5 = vld [vmem:[%s1139_s1 + $0x10] sm:$0x1f]   ;;  %vm451_vm3 = vcmask 261120  }
   0x2   :  { %v215_v4 = vsel %vm213_vm1, %v214_v2, 0  ;;  %789 = vmatprep.subr.bf16.mxu0 %v920_v0  ;;  %v923_v6 = vld [vmem:[%s1140_s0] sm:$0xff]   ;;  %v924_v8 = vld [vmem:[%s1140_s0 + $0x8] sm:$0xff]   ;;  %v925_v9 = vld [vmem:[%s1140_s0 + $0x10] sm:$0xff]  }
   0x3   :  { %790 = vmatpush3.bf16.msra.mxu0 %v920_v0  ;;  %v217_v7 = vand.u32 %v922_v5, %v215_v4  ;;  %795 = vmatprep.mubr.msk.bf16.mxu0 %vm163_vm2, %v923_v6  ;;  %v926_v10 = vld [vmem:[%s1140_s0 + $0x18] sm:$0xff]   ;;  %v927_v11 = vld [vmem:[%s1140_s0 + $0x20] sm:$0xff]   ;;  %v928_v12 = vld [vmem:[%s1140_s0 + $0x28] sm:$0xff]  }
   0x4   :  { %791 = vmatprep.subr.bf16.mxu0 %v921_v3  ;;  %v929_v13 = vld [vmem:[%s1140_s0 + $0x30] sm:$0xff]   ;;  %v930_v14 = vld [vmem:[%s1140_s0 + $0x38] sm:$0xff]   ;;  %v931_v15 = vld [vmem:[%s1140_s0 + $0x40] sm:$0xff]  }
   0x5   :  { %v932_v16 = vld [vmem:[%s1140_s0 + $0x48] sm:$0xff]   ;;  %v933_v17 = vld [vmem:[%s1140_s0 + $0x50] sm:$0xff]   ;;  %v934_v18 = vld [vmem:[%s1140_s0 + $0x58] sm:$0xff]  }
   0x6   :  { %v935_v19 = vld [vmem:[%s1140_s0 + $0x60] sm:$0xff]   ;;  %v936_v20 = vld [vmem:[%s1140_s0 + $0x68] sm:$0xff]   ;;  %v937_v21 = vld [vmem:[%s1140_s0 + $0x70] sm:$0xff]  }
   0x7   :  { %792 = vmatpush3.bf16.msra.mxu0 %v921_v3  ;;  %v938_v22 = vld [vmem:[%s1140_s0 + $0x78] sm:$0xff]   ;;  %v939_v23 = vld [vmem:[%s1141_s3] sm:$0xff]   ;;  %v940_v24 = vld [vmem:[%s1141_s3 + $0x8] sm:$0xff]  }
   0x8   :  { %793 = vmatprep.subr.bf16.mxu0 %v217_v7  ;;  %827 = vmatprep.subr.bf16.mxu1 %v939_v23  ;;  %v1054_v25 = vld [vmem:[%s1142_s2] ss:$0 sm:$0xff] }
   0x9   :  { %828 = vmatpush3.bf16.msra.mxu1 %v939_v23 }
   0xa   :  { %829 = vmatprep.subr.bf16.mxu1 %v940_v24 }
   0xb   :  { %794 = vmatpush3.bf16.msra.mxu0 %v217_v7 }
   0xd   :  { %830 = vmatpush3.bf16.msra.mxu1 %v940_v24 }
   0xe   :  { %796 = vmatmul.mubr.msk.bf16.vlgmr.msra.gmra.mrb[0].mxu0 %vm163_vm2, %v924_v8 }
   0xf   :  { %799 = vmatprep.mubr.msk.bf16.mxu0 %vm163_vm2, %v925_v9 }
  0x16   :  { %800 = vmatmul.mubr.msk.bf16.gmra.mrb[4].mxu0 %vm163_vm2, %v926_v10 }
  0x17   :  { %803 = vmatprep.mubr.msk.bf16.mxu0 %vm163_vm2, %v927_v11 }
  0x1e   :  { %804 = vmatmul.mubr.msk.bf16.gmra.mrb[8].mxu0 %vm163_vm2, %v928_v12 }
  0x1f   :  { %807 = vmatprep.mubr.msk.bf16.mxu0 %vm163_vm2, %v929_v13 }
  0x26   :  { %808 = vmatmul.mubr.msk.bf16.gmra.mrb[12].mxu0 %vm163_vm2, %v930_v14 }
  0x27   :  { %811 = vmatprep.mubr.msk.bf16.mxu0 %vm163_vm2, %v931_v15 }
  0x2e   :  { %812 = vmatmul.mubr.msk.bf16.gmra.mrb[16].mxu0 %vm163_vm2, %v932_v16 }
  0x2f   :  { %815 = vmatprep.mubr.msk.bf16.mxu0 %vm163_vm2, %v933_v17 }
  0x36   :  { %816 = vmatmul.mubr.msk.bf16.gmra.mrb[20].mxu0 %vm163_vm2, %v934_v18 }
  0x37   :  { %819 = vmatprep.mubr.msk.bf16.mxu0 %vm163_vm2, %v935_v19 }
  0x3e   :  { %820 = vmatmul.mubr.msk.bf16.gmra.mrb[24].mxu0 %vm163_vm2, %v936_v20 }
  0x3f   :  { %823 = vmatprep.mubr.msk.bf16.mxu0 %vm163_vm2, %v937_v21 }
  0x46   :  { %824 = vmatmul.mubr.msk.bf16.gmra.mrb[28].mxu0 %vm163_vm2, %v938_v22 }
  0xe1   :  { %v797_v26 = vpop.f32.mrb[0].mxu0 }
  0xe2   :  { %v262_v27 = vadd.f32 %v797_v26, %v1054_v25  ;;  %v253_v28 = vpop.f32.mrb[1].mxu0 }
  0xe3   :  { %v254_v29 = vadd.f32 %v1054_v25, %v253_v28  ;;  %v798_v30 = vpop.f32.mrb[2].mxu0 }
  0xe4   :  { %v265_v31 = vadd.f32 %v798_v30, %v1054_v25  ;;  %v256_v32 = vpop.f32.mrb[3].mxu0  ;;  %v382_v34 = vmax.f32 %v262_v27, 0.0 }
  0xe5   :  { %v257_v33 = vadd.f32 %v1054_v25, %v256_v32  ;;  %v380_v36 = vmax.f32 %v254_v29, 0.0 }
  0xe6   :  { %v383_v35 = vmax.f32 %v265_v31, 0.0 }
  0xe7   :  { %v381_v37 = vmax.f32 %v257_v33, 0.0 }
  0xe8   :  { %v413_v38 = vpack.c.bf16 %v383_v35, %v382_v34 }
  0xe9   :  { %v801_v39 = vpop.f32.mrb[4].mxu0  ;;  %v412_v40 = vpack.c.bf16 %v381_v37, %v380_v36 }
  0xea   :  { %v278_v41 = vadd.f32 %v801_v39, %v1054_v25  ;;  %v269_v42 = vpop.f32.mrb[5].mxu0 }
  0xeb   :  { %v270_v43 = vadd.f32 %v1054_v25, %v269_v42  ;;  %v802_v44 = vpop.f32.mrb[6].mxu0  ;;  %831 = vmatprep.mubr.msk.bf16.mxu1 %vm451_vm3, %v412_v40 }
  0xec   :  { %v281_v45 = vadd.f32 %v802_v44, %v1054_v25  ;;  %v272_v46 = vpop.f32.mrb[7].mxu0  ;;  %832 = vmatmul.mubr.msk.bf16.vlgmr.msra.gmra.mrb[0].mxu1 %vm451_vm3, %v413_v38  ;;  %v386_v48 = vmax.f32 %v278_v41, 0.0 }
  0xed   :  { %v273_v47 = vadd.f32 %v1054_v25, %v272_v46  ;;  %v384_v50 = vmax.f32 %v270_v43, 0.0 }
  0xee   :  { %v387_v49 = vmax.f32 %v281_v45, 0.0 }
  0xef   :  { %v385_v51 = vmax.f32 %v273_v47, 0.0 }
  0xf0   :  { %v415_v52 = vpack.c.bf16 %v387_v49, %v386_v48 }
  0xf1   :  { %v414_v53 = vpack.c.bf16 %v385_v51, %v384_v50  ;;  %v805_v54 = vpop.f32.mrb[8].mxu0 }
  0xf2   :  { %v294_v55 = vadd.f32 %v805_v54, %v1054_v25  ;;  %v285_v56 = vpop.f32.mrb[9].mxu0 }
  0xf3   :  { %v286_v57 = vadd.f32 %v1054_v25, %v285_v56  ;;  %v806_v58 = vpop.f32.mrb[10].mxu0  ;;  %835 = vmatprep.mubr.msk.bf16.mxu1 %vm451_vm3, %v414_v53 }
  0xf4   :  { %v297_v59 = vadd.f32 %v806_v58, %v1054_v25  ;;  %v288_v60 = vpop.f32.mrb[11].mxu0  ;;  %836 = vmatmul.mubr.msk.bf16.gmra.mrb[4].mxu1 %vm451_vm3, %v415_v52  ;;  %v390_v62 = vmax.f32 %v294_v55, 0.0 }
  0xf5   :  { %v289_v61 = vadd.f32 %v1054_v25, %v288_v60  ;;  %v388_v0 = vmax.f32 %v286_v57, 0.0 }
  0xf6   :  { %v391_v63 = vmax.f32 %v297_v59, 0.0 }
  0xf7   :  { %v389_v1 = vmax.f32 %v289_v61, 0.0 }
  0xf8   :  { %v417_v2 = vpack.c.bf16 %v391_v63, %v390_v62 }
  0xf9   :  { %v416_v3 = vpack.c.bf16 %v389_v1, %v388_v0  ;;  %v809_v4 = vpop.f32.mrb[12].mxu0 }
  0xfa   :  { %v310_v5 = vadd.f32 %v809_v4, %v1054_v25  ;;  %v301_v6 = vpop.f32.mrb[13].mxu0 }
  0xfb   :  { %v302_v7 = vadd.f32 %v1054_v25, %v301_v6  ;;  %v810_v8 = vpop.f32.mrb[14].mxu0  ;;  %839 = vmatprep.mubr.msk.bf16.mxu1 %vm451_vm3, %v416_v3 }
  0xfc   :  { %v313_v9 = vadd.f32 %v810_v8, %v1054_v25  ;;  %v304_v10 = vpop.f32.mrb[15].mxu0  ;;  %840 = vmatmul.mubr.msk.bf16.gmra.mrb[0].mxu1 %vm451_vm3, %v417_v2  ;;  %v394_v12 = vmax.f32 %v310_v5, 0.0 }
  0xfd   :  { %v305_v11 = vadd.f32 %v1054_v25, %v304_v10  ;;  %v392_v14 = vmax.f32 %v302_v7, 0.0 }
  0xfe   :  { %v395_v13 = vmax.f32 %v313_v9, 0.0 }
  0xff   :  { %v393_v15 = vmax.f32 %v305_v11, 0.0  ;;  %v733_v11 = vld [vmem:[%s1143_s4] ss:$0 sm:$0xff] }
 0x100   :  { %v419_v16 = vpack.c.bf16 %v395_v13, %v394_v12  ;;  %v867_v12 = vadd.f32 %v733_v11, %v733_v11 }
 0x101   :  { %v418_v17 = vpack.c.bf16 %v393_v15, %v392_v14  ;;  %v813_v18 = vpop.f32.mrb[16].mxu0 }
 0x102   :  { %v326_v19 = vadd.f32 %v813_v18, %v1054_v25  ;;  %v317_v20 = vpop.f32.mrb[17].mxu0  ;;  %v868_v13 = vadd.f32 %v867_v12, %v733_v11 }
 0x103   :  { %v318_v21 = vadd.f32 %v1054_v25, %v317_v20  ;;  %v814_v22 = vpop.f32.mrb[18].mxu0  ;;  %843 = vmatprep.mubr.msk.bf16.mxu1 %vm451_vm3, %v418_v17 }
 0x104   :  { %v329_v23 = vadd.f32 %v814_v22, %v1054_v25  ;;  %v320_v24 = vpop.f32.mrb[19].mxu0  ;;  %844 = vmatmul.mubr.msk.bf16.gmra.mrb[4].mxu1 %vm451_vm3, %v419_v16  ;;  %v398_v27 = vmax.f32 %v326_v19, 0.0  ;;  %v869_v14 = vadd.f32 %v868_v13, %v733_v11 }
 0x105   :  { %v321_v26 = vadd.f32 %v1054_v25, %v320_v24  ;;  %v396_v29 = vmax.f32 %v318_v21, 0.0 }
 0x106   :  { %v399_v28 = vmax.f32 %v329_v23, 0.0 }
 0x107   :  { %v397_v30 = vmax.f32 %v321_v26, 0.0 }
 0x108   :  { %v421_v31 = vpack.c.bf16 %v399_v28, %v398_v27 }
 0x109   :  { %v420_v32 = vpack.c.bf16 %v397_v30, %v396_v29  ;;  %v817_v33 = vpop.f32.mrb[20].mxu0 }
 0x10a   :  { %v342_v34 = vadd.f32 %v817_v33, %v1054_v25  ;;  %v333_v35 = vpop.f32.mrb[21].mxu0 }
 0x10b   :  { %v334_v36 = vadd.f32 %v1054_v25, %v333_v35  ;;  %v818_v37 = vpop.f32.mrb[22].mxu0  ;;  %847 = vmatprep.mubr.msk.bf16.mxu1 %vm451_vm3, %v420_v32 }
 0x10c   :  { %v345_v38 = vadd.f32 %v818_v37, %v1054_v25  ;;  %v336_v39 = vpop.f32.mrb[23].mxu0  ;;  %848 = vmatmul.mubr.msk.bf16.gmra.mrb[0].mxu1 %vm451_vm3, %v421_v31  ;;  %v402_v41 = vmax.f32 %v342_v34, 0.0 }
 0x10d   :  { %v337_v40 = vadd.f32 %v1054_v25, %v336_v39  ;;  %v400_v43 = vmax.f32 %v334_v36, 0.0 }
 0x10e   :  { %v403_v42 = vmax.f32 %v345_v38, 0.0 }
 0x10f   :  { %v401_v44 = vmax.f32 %v337_v40, 0.0 }
 0x110   :  { %v423_v45 = vpack.c.bf16 %v403_v42, %v402_v41 }
 0x111   :  { %v422_v46 = vpack.c.bf16 %v401_v44, %v400_v43  ;;  %v821_v47 = vpop.f32.mrb[24].mxu0 }
 0x112   :  { %v358_v48 = vadd.f32 %v821_v47, %v1054_v25  ;;  %v349_v49 = vpop.f32.mrb[25].mxu0 }
 0x113   :  { %v350_v50 = vadd.f32 %v1054_v25, %v349_v49  ;;  %v822_v51 = vpop.f32.mrb[26].mxu0  ;;  %851 = vmatprep.mubr.msk.bf16.mxu1 %vm451_vm3, %v422_v46 }
 0x114   :  { %v361_v52 = vadd.f32 %v822_v51, %v1054_v25  ;;  %v352_v53 = vpop.f32.mrb[27].mxu0  ;;  %852 = vmatmul.mubr.msk.bf16.gmra.mrb[4].mxu1 %vm451_vm3, %v423_v45  ;;  %v406_v55 = vmax.f32 %v358_v48, 0.0 }
 0x115   :  { %v353_v54 = vadd.f32 %v1054_v25, %v352_v53  ;;  %v404_v57 = vmax.f32 %v350_v50, 0.0 }
 0x116   :  { %v407_v56 = vmax.f32 %v361_v52, 0.0 }
 0x117   :  { %v405_v58 = vmax.f32 %v353_v54, 0.0 }
 0x118   :  { %v425_v59 = vpack.c.bf16 %v407_v56, %v406_v55 }
 0x119   :  { %v424_v60 = vpack.c.bf16 %v405_v58, %v404_v57  ;;  %v825_v61 = vpop.f32.mrb[28].mxu0 }
 0x11a   :  { %v374_v62 = vadd.f32 %v825_v61, %v1054_v25  ;;  %v365_v63 = vpop.f32.mrb[29].mxu0 }
 0x11b   :  { %v366_v0 = vadd.f32 %v1054_v25, %v365_v63  ;;  %v826_v1 = vpop.f32.mrb[30].mxu0  ;;  %855 = vmatprep.mubr.msk.bf16.mxu1 %vm451_vm3, %v424_v60 }
 0x11c   :  { %v377_v2 = vadd.f32 %v826_v1, %v1054_v25  ;;  %v368_v3 = vpop.f32.mrb[31].mxu0  ;;  %856 = vmatmul.mubr.msk.bf16.gmra.mrb[0].mxu1 %vm451_vm3, %v425_v59  ;;  %v410_v5 = vmax.f32 %v374_v62, 0.0 }
 0x11d   :  { %v369_v4 = vadd.f32 %v1054_v25, %v368_v3  ;;  %v408_v7 = vmax.f32 %v366_v0, 0.0 }
 0x11e   :  { %v411_v6 = vmax.f32 %v377_v2, 0.0 }
 0x11f   :  { %v409_v8 = vmax.f32 %v369_v4, 0.0 }
 0x120   :  { %v427_v9 = vpack.c.bf16 %v411_v6, %v410_v5 }
 0x121   :  { %v426_v10 = vpack.c.bf16 %v409_v8, %v408_v7 }
 0x123   :  { %859 = vmatprep.mubr.msk.bf16.mxu1 %vm451_vm3, %v426_v10 }
 0x124   :  { %860 = vmatmul.mubr.msk.bf16.gmra.mrb[4].mxu1 %vm451_vm3, %v427_v9 }
 0x1ef   :  { %v857_v15 = vpop.f32.mrb[0].mxu1 }
 0x1f0   :  { %v866_v16 = vadd.f32 %v869_v14, %v857_v15  ;;  %v630_v25 = vpop.f32.mrb[1].mxu1 }
 0x1f1   :  { %v870_v17 = vadd.f32 %v869_v14, %v630_v25  ;;  %v858_v18 = vpop.f32.mrb[2].mxu1 }
 0x1f2   :  { %687 = vst.msk [vmem:[%s1144_s5 + $0x10] sm:$0xff] %vm451_vm3, %v866_v16  ;;  %v874_v19 = vadd.f32 %v869_v14, %v858_v18  ;;  %v633_v20 = vpop.f32.mrb[3].mxu1 }
 0x1f3   :  { %685 = vst.msk [vmem:[%s1144_s5] sm:$0xff] %vm451_vm3, %v870_v17  ;;  %v878_v21 = vadd.f32 %v869_v14, %v633_v20 }
 0x1f4   :  { %688 = vst.msk [vmem:[%s1144_s5 + $0x18] sm:$0xff] %vm451_vm3, %v874_v19 }
 0x1f5   :  { %686 = vst.msk [vmem:[%s1144_s5 + $0x8] sm:$0xff] %vm451_vm3, %v878_v21 }
 0x1f7   :  { %v861_v22 = vpop.f32.mrb[4].mxu1 }
 0x1f8   :  { %v882_v23 = vadd.f32 %v869_v14, %v861_v22  ;;  %v646_v24 = vpop.f32.mrb[5].mxu1 }
 0x1f9   :  { %v886_v26 = vadd.f32 %v869_v14, %v646_v24  ;;  %v862_v27 = vpop.f32.mrb[6].mxu1 }
 0x1fa   :  { %691 = vst.msk [vmem:[%s1144_s5 + $0x30] sm:$0xff] %vm451_vm3, %v882_v23  ;;  %v890_v28 = vadd.f32 %v869_v14, %v862_v27  ;;  %v649_v29 = vpop.f32.mrb[7].mxu1 }
 0x1fb   :  { %689 = vst.msk [vmem:[%s1144_s5 + $0x20] sm:$0xff] %vm451_vm3, %v886_v26  ;;  %v894_v30 = vadd.f32 %v869_v14, %v649_v29 }
 0x1fc   :  { %692 = vst.msk [vmem:[%s1144_s5 + $0x38] sm:$0xff] %vm451_vm3, %v890_v28 }
 0x1fd   :  { %690 = vst.msk [vmem:[%s1144_s5 + $0x28] sm:$0xff] %vm451_vm3, %v894_v30 }

// kernel: face_classifier_forward.5
= control target key start
LH: loop header
LB: loop body
LE: loop exit
PB: predicated region body
PF: predicated region fallthrough
CT: control target
= control target key end

     0   :  { %vm220_vm0 = vcmask 1043456   ;;  %vm221_vm1 = vcmask 1044480   ;;  %vm171_vm2 = vcmask 334848   ;;  %v1223_v1 = vmov 65535   ;;  %s1454_s1 = inlined_call_operand.vmem [shape: bf16[41,32], index: 1, kind: input, shape index: {}]   ;;  %s1455_s0 = inlined_call_operand.vmem [shape: bf16[4,64,41], index: 0, kind: input, shape index: {}]   ;;  %s1456_s3 = inlined_call_operand.vmem [shape: bf16[32,32], index: 3, kind: input, shape index: {}]   ;;  %s1457_s5 = inlined_call_operand.vmem [shape: f32[32,1], index: 5, kind: input, shape index: {}]   ;;  %s1458_s2 = inlined_call_operand.vmem [shape: f32[1,32], index: 2, kind: input, shape index: {}]   ;;  %s1459_s6 = inlined_call_operand.<no memory space> [shape: f32[1,1], index: 6, kind: input, shape index: {}]   ;;  %s1460_s4 = inlined_call_operand.vmem [shape: f32[1,32], index: 4, kind: input, shape index: {}]   ;;  %s1461_s7 = inlined_call_operand.vmem [shape: f32[64,1], index: 7, kind: output, shape index: {}]  }
   0x1   :  { %v1170_v0 = vld [vmem:[%s1454_s1] sm:$0xff]   ;;  %v222_v2 = vsel %vm220_vm0, 4294967295, %v1223_v1  ;;  %v1171_v3 = vld [vmem:[%s1454_s1 + $0x8] sm:$0xff]   ;;  %v1172_v5 = vld [vmem:[%s1454_s1 + $0x10] sm:$0x1f]   ;;  %vm459_vm3 = vcmask 261120  }
   0x2   :  { %v223_v4 = vsel %vm221_vm1, %v222_v2, 0  ;;  %1007 = vmatprep.subr.bf16.mxu0 %v1170_v0  ;;  %v1173_v6 = vld [vmem:[%s1455_s0] sm:$0xff]   ;;  %v1174_v8 = vld [vmem:[%s1455_s0 + $0x8] sm:$0xff]   ;;  %v1175_v9 = vld [vmem:[%s1455_s0 + $0x10] sm:$0xff]   ;;  %vm881_vm4 = vcmask 7168  }
   0x3   :  { %1008 = vmatpush3.bf16.msra.mxu0 %v1170_v0  ;;  %v225_v7 = vand.u32 %v1172_v5, %v223_v4  ;;  %1013 = vmatprep.mubr.msk.bf16.mxu0 %vm171_vm2, %v1173_v6  ;;  %v1176_v10 = vld [vmem:[%s1455_s0 + $0x18] sm:$0xff]   ;;  %v1177_v11 = vld [vmem:[%s1455_s0 + $0x20] sm:$0xff]   ;;  %v1178_v12 = vld [vmem:[%s1455_s0 + $0x28] sm:$0xff]  }
   0x4   :  { %1009 = vmatprep.subr.bf16.mxu0 %v1171_v3  ;;  %v1179_v13 = vld [vmem:[%s1455_s0 + $0x30] sm:$0xff]   ;;  %v1180_v14 = vld [vmem:[%s1455_s0 + $0x38] sm:$0xff]   ;;  %v1181_v15 = vld [vmem:[%s1455_s0 + $0x40] sm:$0xff]  }
   0x5   :  { %v1182_v16 = vld [vmem:[%s1455_s0 + $0x48] sm:$0xff]   ;;  %v1183_v17 = vld [vmem:[%s1455_s0 + $0x50] sm:$0xff]   ;;  %v1184_v18 = vld [vmem:[%s1455_s0 + $0x58] sm:$0xff]  }
   0x6   :  { %v1185_v19 = vld [vmem:[%s1455_s0 + $0x60] sm:$0xff]   ;;  %v1186_v20 = vld [vmem:[%s1455_s0 + $0x68] sm:$0xff]   ;;  %v1187_v21 = vld [vmem:[%s1455_s0 + $0x70] sm:$0xff]  }
   0x7   :  { %1010 = vmatpush3.bf16.msra.mxu0 %v1171_v3  ;;  %v1188_v22 = vld [vmem:[%s1455_s0 + $0x78] sm:$0xff]   ;;  %v1189_v23 = vld [vmem:[%s1456_s3] sm:$0xff]   ;;  %v1190_v24 = vld [vmem:[%s1456_s3 + $0x8] sm:$0xff]  }
   0x8   :  { %1011 = vmatprep.subr.bf16.mxu0 %v225_v7  ;;  %1045 = vmatprep.subr.bf16.mxu1 %v1189_v23  ;;  %v693_v25 = vld [vmem:[%s1457_s5] sm:$0xff]  ;;  %v694_v26 = vld [vmem:[%s1457_s5 + $0x8] sm:$0xff]  ;;  %v695_v27 = vld [vmem:[%s1457_s5 + $0x10] sm:$0xff] }
   0x9   :  { %1046 = vmatpush3.bf16.msra.mxu1 %v1189_v23  ;;  %v1101_v28 = vpack.c.bf16 %v694_v26, %v693_v25  ;;  %v696_v29 = vld [vmem:[%s1457_s5 + $0x18] sm:$0xff]  ;;  %v1358_v31 = vld [vmem:[%s1458_s2] ss:$0 sm:$0xff] }
   0xa   :  { %1047 = vmatprep.subr.bf16.mxu1 %v1190_v24  ;;  %v1105_v30 = vpack.c.bf16 %v696_v29, %v695_v27 }
   0xb   :  { %1012 = vmatpush3.bf16.msra.mxu0 %v225_v7 }
   0xc   :  { %1102 = vmatprep.subr.bf16.mxu0 %v1101_v28 }
   0xd   :  { %1048 = vmatpush3.bf16.msra.mxu1 %v1190_v24 }
   0xe   :  { %1014 = vmatmul.mubr.msk.bf16.vlgmr.msra.gmra.mrb[0].mxu0 %vm171_vm2, %v1174_v8  ;;  %1109 = vmatprep.subr.bf16.mxu1 %v1101_v28 }
   0xf   :  { %1017 = vmatprep.mubr.msk.bf16.mxu0 %vm171_vm2, %v1175_v9  ;;  %1104 = vmatpush3.bf16.msra.mxu0 %v1101_v28 }
  0x10   :  { %1106 = vmatprep.subr.bf16.mxu0 %v1105_v30 }
  0x13   :  { %1108 = vmatpush3.bf16.msra.mxu0 %v1105_v30 }
  0x16   :  { %1018 = vmatmul.mubr.msk.bf16.gmra.mrb[4].mxu0 %vm171_vm2, %v1176_v10 }
  0x17   :  { %1021 = vmatprep.mubr.msk.bf16.mxu0 %vm171_vm2, %v1177_v11 }
  0x1e   :  { %1022 = vmatmul.mubr.msk.bf16.gmra.mrb[8].mxu0 %vm171_vm2, %v1178_v12 }
  0x1f   :  { %1025 = vmatprep.mubr.msk.bf16.mxu0 %vm171_vm2, %v1179_v13 }
  0x26   :  { %1026 = vmatmul.mubr.msk.bf16.gmra.mrb[12].mxu0 %vm171_vm2, %v1180_v14 }
  0x27   :  { %1029 = vmatprep.mubr.msk.bf16.mxu0 %vm171_vm2, %v1181_v15 }
  0x2e   :  { %1030 = vmatmul.mubr.msk.bf16.gmra.mrb[16].mxu0 %vm171_vm2, %v1182_v16 }
  0x2f   :  { %1033 = vmatprep.mubr.msk.bf16.mxu0 %vm171_vm2, %v1183_v17 }
  0x36   :  { %1034 = vmatmul.mubr.msk.bf16.gmra.mrb[20].mxu0 %vm171_vm2, %v1184_v18 }
  0x37   :  { %1037 = vmatprep.mubr.msk.bf16.mxu0 %vm171_vm2, %v1185_v19 }
  0x3e   :  { %1038 = vmatmul.mubr.msk.bf16.gmra.mrb[24].mxu0 %vm171_vm2, %v1186_v20 }
  0x3f   :  { %1041 = vmatprep.mubr.msk.bf16.mxu0 %vm171_vm2, %v1187_v21 }
  0x46   :  { %1042 = vmatmul.mubr.msk.bf16.gmra.mrb[28].mxu0 %vm171_vm2, %v1188_v22 }
  0xe1   :  { %v1015_v32 = vpop.f32.mrb[0].mxu0 }
  0xe2   :  { %v270_v33 = vadd.f32 %v1015_v32, %v1358_v31  ;;  %v261_v34 = vpop.f32.mrb[1].mxu0 }
  0xe3   :  { %v262_v35 = vadd.f32 %v1358_v31, %v261_v34  ;;  %v1016_v36 = vpop.f32.mrb[2].mxu0 }
  0xe4   :  { %v273_v37 = vadd.f32 %v1016_v36, %v1358_v31  ;;  %v264_v38 = vpop.f32.mrb[3].mxu0  ;;  %v390_v40 = vmax.f32 %v270_v33, 0.0 }
  0xe5   :  { %v265_v39 = vadd.f32 %v1358_v31, %v264_v38  ;;  %v388_v42 = vmax.f32 %v262_v35, 0.0 }
  0xe6   :  { %v391_v41 = vmax.f32 %v273_v37, 0.0 }
  0xe7   :  { %v389_v43 = vmax.f32 %v265_v39, 0.0 }
  0xe8   :  { %v421_v44 = vpack.c.bf16 %v391_v41, %v390_v40 }
  0xe9   :  { %v1019_v45 = vpop.f32.mrb[4].mxu0  ;;  %v420_v46 = vpack.c.bf16 %v389_v43, %v388_v42 }
  0xea   :  { %v286_v47 = vadd.f32 %v1019_v45, %v1358_v31  ;;  %v277_v48 = vpop.f32.mrb[5].mxu0 }
  0xeb   :  { %v278_v49 = vadd.f32 %v1358_v31, %v277_v48  ;;  %v1020_v50 = vpop.f32.mrb[6].mxu0  ;;  %1049 = vmatprep.mubr.msk.bf16.mxu1 %vm459_vm3, %v420_v46 }
  0xec   :  { %v289_v51 = vadd.f32 %v1020_v50, %v1358_v31  ;;  %v280_v52 = vpop.f32.mrb[7].mxu0  ;;  %1050 = vmatmul.mubr.msk.bf16.vlgmr.msra.gmra.mrb[0].mxu1 %vm459_vm3, %v421_v44  ;;  %v394_v54 = vmax.f32 %v286_v47, 0.0 }
  0xed   :  { %v281_v53 = vadd.f32 %v1358_v31, %v280_v52  ;;  %1111 = vmatpush3.bf16.msra.mxu1 %v1101_v28  ;;  %v392_v56 = vmax.f32 %v278_v49, 0.0 }
  0xee   :  { %v395_v55 = vmax.f32 %v289_v51, 0.0  ;;  %1110 = vmatprep.subr.bf16.mxu1 %v1105_v30 }
  0xef   :  { %v393_v57 = vmax.f32 %v281_v53, 0.0 }
  0xf0   :  { %v423_v58 = vpack.c.bf16 %v395_v55, %v394_v54 }
  0xf1   :  { %v422_v59 = vpack.c.bf16 %v393_v57, %v392_v56  ;;  %v1023_v60 = vpop.f32.mrb[8].mxu0  ;;  %1112 = vmatpush3.bf16.msra.mxu1 %v1105_v30 }
  0xf2   :  { %v302_v61 = vadd.f32 %v1023_v60, %v1358_v31  ;;  %v293_v62 = vpop.f32.mrb[9].mxu0 }
  0xf3   :  { %v294_v63 = vadd.f32 %v1358_v31, %v293_v62  ;;  %v1024_v0 = vpop.f32.mrb[10].mxu0  ;;  %1053 = vmatprep.mubr.msk.bf16.mxu1 %vm459_vm3, %v422_v59 }
  0xf4   :  { %v305_v1 = vadd.f32 %v1024_v0, %v1358_v31  ;;  %v296_v2 = vpop.f32.mrb[11].mxu0  ;;  %1054 = vmatmul.mubr.msk.bf16.gmra.mrb[4].mxu1 %vm459_vm3, %v423_v58  ;;  %v398_v4 = vmax.f32 %v302_v61, 0.0 }
  0xf5   :  { %v297_v3 = vadd.f32 %v1358_v31, %v296_v2  ;;  %v396_v6 = vmax.f32 %v294_v63, 0.0 }
  0xf6   :  { %v399_v5 = vmax.f32 %v305_v1, 0.0 }
  0xf7   :  { %v397_v7 = vmax.f32 %v297_v3, 0.0 }
  0xf8   :  { %v425_v8 = vpack.c.bf16 %v399_v5, %v398_v4 }
  0xf9   :  { %v424_v9 = vpack.c.bf16 %v397_v7, %v396_v6  ;;  %v1027_v10 = vpop.f32.mrb[12].mxu0 }
  0xfa   :  { %v318_v11 = vadd.f32 %v1027_v10, %v1358_v31  ;;  %v309_v12 = vpop.f32.mrb[13].mxu0 }
  0xfb   :  { %v310_v13 = vadd.f32 %v1358_v31, %v309_v12  ;;  %v1028_v14 = vpop.f32.mrb[14].mxu0  ;;  %1057 = vmatprep.mubr.msk.bf16.mxu1 %vm459_vm3, %v424_v9 }
  0xfc   :  { %v321_v15 = vadd.f32 %v1028_v14, %v1358_v31  ;;  %v312_v16 = vpop.f32.mrb[15].mxu0  ;;  %1058 = vmatmul.mubr.msk.bf16.gmra.mrb[0].mxu1 %vm459_vm3, %v425_v8  ;;  %v402_v18 = vmax.f32 %v318_v11, 0.0 }
  0xfd   :  { %v313_v17 = vadd.f32 %v1358_v31, %v312_v16  ;;  %v400_v20 = vmax.f32 %v310_v13, 0.0 }
  0xfe   :  { %v403_v19 = vmax.f32 %v321_v15, 0.0 }
  0xff   :  { %v401_v21 = vmax.f32 %v313_v17, 0.0  ;;  %v12_v17 = vstv %s1459_s6 }
 0x100   :  { %v427_v22 = vpack.c.bf16 %v403_v19, %v402_v18  ;;  %13 = vst [vmem:[#allocation2] sm:$0x1] %v12_v17  ;;  %v930_v18 = vld [vmem:[%s1460_s4] ss:$0 sm:$0xff] }
 0x101   :  { %v426_v23 = vpack.c.bf16 %v401_v21, %v400_v20  ;;  %v1031_v24 = vpop.f32.mrb[16].mxu0 }
 0x102   :  { %v334_v25 = vadd.f32 %v1031_v24, %v1358_v31  ;;  %v325_v26 = vpop.f32.mrb[17].mxu0 }
 0x103   :  { %v326_v27 = vadd.f32 %v1358_v31, %v325_v26  ;;  %v1032_v28 = vpop.f32.mrb[18].mxu0  ;;  %1061 = vmatprep.mubr.msk.bf16.mxu1 %vm459_vm3, %v426_v23 }
 0x104   :  { %v337_v29 = vadd.f32 %v1032_v28, %v1358_v31  ;;  %v328_v30 = vpop.f32.mrb[19].mxu0  ;;  %1062 = vmatmul.mubr.msk.bf16.gmra.mrb[4].mxu1 %vm459_vm3, %v427_v22  ;;  %v406_v33 = vmax.f32 %v334_v25, 0.0 }
 0x105   :  { %v329_v32 = vadd.f32 %v1358_v31, %v328_v30  ;;  %v404_v35 = vmax.f32 %v326_v27, 0.0 }
 0x106   :  { %v407_v34 = vmax.f32 %v337_v29, 0.0 }
 0x107   :  { %v405_v36 = vmax.f32 %v329_v32, 0.0 }
 0x108   :  { %v429_v37 = vpack.c.bf16 %v407_v34, %v406_v33 }
 0x109   :  { %v428_v38 = vpack.c.bf16 %v405_v36, %v404_v35  ;;  %v1035_v39 = vpop.f32.mrb[20].mxu0 }
 0x10a   :  { %v350_v40 = vadd.f32 %v1035_v39, %v1358_v31  ;;  %v341_v41 = vpop.f32.mrb[21].mxu0 }
 0x10b   :  { %v342_v42 = vadd.f32 %v1358_v31, %v341_v41  ;;  %v1036_v43 = vpop.f32.mrb[22].mxu0  ;;  %1065 = vmatprep.mubr.msk.bf16.mxu1 %vm459_vm3, %v428_v38  ;;  %v949_v38 = vld [vmem:[#allocation2] ss:$0 sm:$0xff] }
 0x10c   :  { %v353_v44 = vadd.f32 %v1036_v43, %v1358_v31  ;;  %v344_v45 = vpop.f32.mrb[23].mxu0  ;;  %1066 = vmatmul.mubr.msk.bf16.gmra.mrb[0].mxu1 %vm459_vm3, %v429_v37  ;;  %v410_v47 = vmax.f32 %v350_v40, 0.0 }
 0x10d   :  { %v345_v46 = vadd.f32 %v1358_v31, %v344_v45  ;;  %v408_v49 = vmax.f32 %v342_v42, 0.0 }
 0x10e   :  { %v411_v48 = vmax.f32 %v353_v44, 0.0 }
 0x10f   :  { %v409_v50 = vmax.f32 %v345_v46, 0.0 }
 0x110   :  { %v431_v51 = vpack.c.bf16 %v411_v48, %v410_v47 }
 0x111   :  { %v430_v52 = vpack.c.bf16 %v409_v50, %v408_v49  ;;  %v1039_v53 = vpop.f32.mrb[24].mxu0 }
 0x112   :  { %v366_v54 = vadd.f32 %v1039_v53, %v1358_v31  ;;  %v357_v55 = vpop.f32.mrb[25].mxu0 }
 0x113   :  { %v358_v56 = vadd.f32 %v1358_v31, %v357_v55  ;;  %v1040_v57 = vpop.f32.mrb[26].mxu0  ;;  %1069 = vmatprep.mubr.msk.bf16.mxu1 %vm459_vm3, %v430_v52 }
 0x114   :  { %v369_v58 = vadd.f32 %v1040_v57, %v1358_v31  ;;  %v360_v59 = vpop.f32.mrb[27].mxu0  ;;  %1070 = vmatmul.mubr.msk.bf16.gmra.mrb[4].mxu1 %vm459_vm3, %v431_v51  ;;  %v414_v61 = vmax.f32 %v366_v54, 0.0 }
 0x115   :  { %v361_v60 = vadd.f32 %v1358_v31, %v360_v59  ;;  %v412_v63 = vmax.f32 %v358_v56, 0.0 }
 0x116   :  { %v415_v62 = vmax.f32 %v369_v58, 0.0 }
 0x117   :  { %v413_v0 = vmax.f32 %v361_v60, 0.0 }
 0x118   :  { %v433_v1 = vpack.c.bf16 %v415_v62, %v414_v61 }
 0x119   :  { %v432_v2 = vpack.c.bf16 %v413_v0, %v412_v63  ;;  %v1043_v3 = vpop.f32.mrb[28].mxu0 }
 0x11a   :  { %v382_v4 = vadd.f32 %v1043_v3, %v1358_v31  ;;  %v373_v5 = vpop.f32.mrb[29].mxu0 }
 0x11b   :  { %v374_v6 = vadd.f32 %v1358_v31, %v373_v5  ;;  %v1044_v7 = vpop.f32.mrb[30].mxu0  ;;  %1073 = vmatprep.mubr.msk.bf16.mxu1 %vm459_vm3, %v432_v2 }
 0x11c   :  { %v385_v8 = vadd.f32 %v1044_v7, %v1358_v31  ;;  %v376_v9 = vpop.f32.mrb[31].mxu0  ;;  %1074 = vmatmul.mubr.msk.bf16.gmra.mrb[0].mxu1 %vm459_vm3, %v433_v1  ;;  %v418_v11 = vmax.f32 %v382_v4, 0.0 }
 0x11d   :  { %v377_v10 = vadd.f32 %v1358_v31, %v376_v9  ;;  %v416_v13 = vmax.f32 %v374_v6, 0.0  ;;  %v1117_v31 = vadd.f32 %v930_v18, %v930_v18 }
 0x11e   :  { %v419_v12 = vmax.f32 %v385_v8, 0.0 }
 0x11f   :  { %v417_v14 = vmax.f32 %v377_v10, 0.0  ;;  %v1118_v19 = vadd.f32 %v1117_v31, %v930_v18 }
 0x120   :  { %v435_v15 = vpack.c.bf16 %v419_v12, %v418_v11 }
 0x121   :  { %v434_v16 = vpack.c.bf16 %v417_v14, %v416_v13  ;;  %v1119_v20 = vadd.f32 %v1118_v19, %v930_v18 }
 0x123   :  { %1077 = vmatprep.mubr.msk.bf16.mxu1 %vm459_vm3, %v434_v16 }
 0x124   :  { %1078 = vmatmul.mubr.msk.bf16.gmra.mrb[4].mxu1 %vm459_vm3, %v435_v15 }
 0x1ef   :  { %v1075_v21 = vpop.f32.mrb[0].mxu1 }
 0x1f0   :  { %v1116_v22 = vadd.f32 %v1119_v20, %v1075_v21  ;;  %v638_v23 = vpop.f32.mrb[1].mxu1 }
 0x1f1   :  { %v1120_v24 = vadd.f32 %v1119_v20, %v638_v23  ;;  %v1076_v25 = vpop.f32.mrb[2].mxu1 }
 0x1f2   :  { %v1124_v26 = vadd.f32 %v1119_v20, %v1076_v25  ;;  %v641_v27 = vpop.f32.mrb[3].mxu1  ;;  %1092 = vmatprep.mubr.msk.f32.mxu1 %vm459_vm3, %v1116_v22 }
 0x1f3   :  { %v1128_v28 = vadd.f32 %v1119_v20, %v641_v27  ;;  %1089 = vmatprep.mubr.msk.f32.mxu0 %vm459_vm3, %v1120_v24 }
 0x1f4   :  { %1093 = vmatmul.mubr.msk.f32.vlgmr.msra.gmra.mrb[8].mxu1 %vm459_vm3, %v1124_v26 }
 0x1f5   :  { %1090 = vmatmul.mubr.msk.f32.vlgmr.msra.gmra.mrb[32].mxu0 %vm459_vm3, %v1128_v28 }
 0x1f7   :  { %v1079_v29 = vpop.f32.mrb[4].mxu1 }
 0x1f8   :  { %v654_v30 = vpop.f32.mrb[5].mxu1  ;;  %v1132_v36 = vadd.f32 %v1119_v20, %v1079_v29 }
 0x1f9   :  { %v1136_v32 = vadd.f32 %v1119_v20, %v654_v30  ;;  %v1080_v33 = vpop.f32.mrb[6].mxu1 }
 0x1fa   :  { %v657_v34 = vpop.f32.mrb[7].mxu1  ;;  %v1140_v37 = vadd.f32 %v1119_v20, %v1080_v33 }
 0x1fb   :  { %v1144_v35 = vadd.f32 %v1119_v20, %v657_v34  ;;  %1095 = vmatprep.mubr.msk.f32.mxu1 %vm459_vm3, %v1136_v32 }
 0x1fd   :  { %1096 = vmatmul.mubr.msk.f32.gmra.mrb[10].mxu1 %vm459_vm3, %v1144_v35 }
 0x1fe   :  { %1098 = vmatprep.mubr.msk.f32.mxu1 %vm459_vm3, %v1132_v36 }
 0x201   :  { %1099 = vmatmul.mubr.msk.f32.gmra.mrb[12].mxu1 %vm459_vm3, %v1140_v37 }
 0x2c7   :  { %v1094_v39 = vpop.f32.mrb[8].mxu1 }
 0x2c8   :  { %v810_v40 = vadd.f32 %v1094_v39, %v949_v38  ;;  %v1091_v41 = vpop.f32.mrb[32].mxu0  ;;  %v804_v42 = vpop.f32.mrb[9].mxu1 }
 0x2c9   :  { %v800_v43 = vadd.f32 %v1091_v41, %v949_v38  ;;  %v805_v44 = vadd.f32 %v949_v38, %v804_v42  ;;  %v794_v45 = vpop.f32.mrb[33].mxu0 }
 0x2ca   :  { %v836_v46 = vsub.f32 0.0, %v810_v40  ;;  %v795_v47 = vadd.f32 %v949_v38, %v794_v45 }
 0x2cb   :  { %v834_v48 = vsub.f32 0.0, %v800_v43  ;;  %v835_v49 = vsub.f32 0.0, %v805_v44 }
 0x2cc   :  { %v847_v50 = vmul.f32 1.442695, %v836_v46  ;;  %v833_v51 = vsub.f32 0.0, %v795_v47 }
 0x2cd   :  { %v843_v52 = vmul.f32 1.442695, %v834_v48  ;;  %v845_v53 = vmul.f32 1.442695, %v835_v49 }
 0x2ce   :  { %1191 = vpow2.f32 %v847_v50  ;;  %v841_v54 = vmul.f32 1.442695, %v833_v51 }
 0x2cf   :  { %1193 = vpow2.f32 %v843_v52 }
 0x2d0   :  { %1195 = vpow2.f32 %v845_v53  ;;  %v1097_v55 = vpop.f32.mrb[10].mxu1 }
 0x2d1   :  { %1197 = vpow2.f32 %v841_v54  ;;  %v820_v56 = vadd.f32 %v1097_v55, %v949_v38  ;;  %v814_v57 = vpop.f32.mrb[11].mxu1 }
 0x2d2   :  { %v815_v58 = vadd.f32 %v949_v38, %v814_v57 }
 0x2d3   :  { %v838_v59 = vsub.f32 0.0, %v820_v56 }
 0x2d4   :  { %v837_v60 = vsub.f32 0.0, %v815_v58  ;;  %v1100_v61 = vpop.f32.mrb[12].mxu1 }
 0x2d5   :  { %v851_v62 = vmul.f32 1.442695, %v838_v59  ;;  %v830_v63 = vadd.f32 %v1100_v61, %v949_v38  ;;  %v824_v0 = vpop.f32.mrb[13].mxu1 }
 0x2d6   :  { %v849_v1 = vmul.f32 1.442695, %v837_v60  ;;  %v825_v2 = vadd.f32 %v949_v38, %v824_v0 }
 0x2d7   :  { %1199 = vpow2.f32 %v851_v62  ;;  %v840_v3 = vsub.f32 0.0, %v830_v63 }
 0x2d8   :  { %v1192_v4 = vpop.eup %1191  ;;  %1201 = vpow2.f32 %v849_v1  ;;  %v839_v5 = vsub.f32 0.0, %v825_v2 }
 0x2d9   :  { %v1194_v6 = vpop.eup %1193  ;;  %v860_v7 = vadd.f32 1.0, %v1192_v4  ;;  %v855_v12 = vmul.f32 1.442695, %v840_v3 }
 0x2da   :  { %v1196_v8 = vpop.eup %1195  ;;  %v858_v9 = vadd.f32 1.0, %v1194_v6  ;;  %v853_v14 = vmul.f32 1.442695, %v839_v5 }
 0x2db   :  { %v1198_v10 = vpop.eup %1197  ;;  %1203 = vrcp.f32 %v860_v7  ;;  %v859_v11 = vadd.f32 1.0, %v1196_v8 }
 0x2dc   :  { %1205 = vrcp.f32 %v858_v9  ;;  %v857_v13 = vadd.f32 1.0, %v1198_v10 }
 0x2dd   :  { %1207 = vrcp.f32 %v859_v11 }
 0x2de   :  { %1209 = vrcp.f32 %v857_v13 }
 0x2df   :  { %1211 = vpow2.f32 %v855_v12 }
 0x2e0   :  { %1213 = vpow2.f32 %v853_v14 }
 0x2e1   :  { %v1200_v15 = vpop.eup %1199 }
 0x2e2   :  { %v1202_v16 = vpop.eup %1201  ;;  %v862_v17 = vadd.f32 1.0, %v1200_v15 }
 0x2e3   :  { %v861_v18 = vadd.f32 1.0, %v1202_v16 }
 0x2e4   :  { %1215 = vrcp.f32 %v862_v17 }
 0x2e5   :  { %v1204_v31 = vpop.eup %1203  ;;  %1217 = vrcp.f32 %v861_v18 }
 0x2e6   :  { %v1206_v19 = vpop.eup %1205  ;;  %885 = vst.msk [vmem:[%s1461_s7 + $0x18] sm:$0xff] %vm881_vm4, %v1204_v31 }
 0x2e7   :  { %v1208_v20 = vpop.eup %1207  ;;  %883 = vst.msk [vmem:[%s1461_s7 + $0x8] sm:$0xff] %vm881_vm4, %v1206_v19 }
 0x2e8   :  { %v1210_v21 = vpop.eup %1209  ;;  %884 = vst.msk [vmem:[%s1461_s7 + $0x10] sm:$0xff] %vm881_vm4, %v1208_v20 }
 0x2e9   :  { %v1212_v22 = vpop.eup %1211  ;;  %882 = vst.msk [vmem:[%s1461_s7] sm:$0xff] %vm881_vm4, %v1210_v21 }
 0x2ea   :  { %v1214_v23 = vpop.eup %1213  ;;  %v864_v24 = vadd.f32 1.0, %v1212_v22 }
 0x2eb   :  { %v863_v25 = vadd.f32 1.0, %v1214_v23 }
 0x2ec   :  { %1219 = vrcp.f32 %v864_v24 }
 0x2ed   :  { %1221 = vrcp.f32 %v863_v25 }
 0x2ee   :  { %v1216_v26 = vpop.eup %1215 }
 0x2ef   :  { %v1218_v27 = vpop.eup %1217  ;;  %887 = vst.msk [vmem:[%s1461_s7 + $0x28] sm:$0xff] %vm881_vm4, %v1216_v26 }
 0x2f0   :  { %886 = vst.msk [vmem:[%s1461_s7 + $0x20] sm:$0xff] %vm881_vm4, %v1218_v27 }
 0x2f6   :  { %v1220_v28 = vpop.eup %1219 }
 0x2f7   :  { %v1222_v29 = vpop.eup %1221  ;;  %889 = vst.msk [vmem:[%s1461_s7 + $0x38] sm:$0xff] %vm881_vm4, %v1220_v28 }
 0x2f8   :  { %888 = vst.msk [vmem:[%s1461_s7 + $0x30] sm:$0xff] %vm881_vm4, %v1222_v29 }

</bundles_post_ra>
